<compile_context>
chip_gen: v7x
topology: tpu7x:2x2x1
jax: 0.10.0
libtpu: 0.0.40
codegen_flags: <defaults>
</compile_context>

<pallas_src>
import functools

import jax
import jax.numpy as jnp
from jax.experimental import pallas as pl
from jax.experimental.pallas import tpu as pltpu

LANE = 128      # lane width of a vreg
SUBLANE = 8     # sublane count of a f32 vreg


def _round_up(x, m):
    return (x + m - 1) // m * m


def dqn_mlp_kernel(s_ref, w_ref, q_ref, *, feat):
    """Fused 3-layer MLP: relu(relu(x@W1+b1)@W2+b2)@W3+b3 on padded operands.

    s_ref: (B_pad, feat)  zero-padded states (cols >= state_size are 0)
    w_ref: (3*feat + 3*SUBLANE, feat) packed slab:
             [W1 (feat rows) | b1 (8 rows, row 0 real) |
              W2 (feat rows) | b2 (8 rows) |
              W3 (feat rows) | b3 (8 rows)]   -- every segment 8-row aligned
    q_ref: (B_pad, feat)  lane-dense Q slab (cols >= action_size are exactly 0)
    """
    F, SL = feat, SUBLANE
    o_w1, o_b1 = 0, F
    o_w2, o_b2 = F + SL, 2 * F + SL
    o_w3, o_b3 = 2 * F + 2 * SL, 3 * F + 2 * SL

    x = s_ref[...]                                                   # (B, F)

    w1 = w_ref[o_w1:o_w1 + F, :]
    b1 = w_ref[o_b1:o_b1 + 1, :]
    h1 = jnp.maximum(
        jnp.dot(x, w1, preferred_element_type=jnp.float32) + b1, 0.0)

    w2 = w_ref[o_w2:o_w2 + F, :]
    b2 = w_ref[o_b2:o_b2 + 1, :]
    h2 = jnp.maximum(
        jnp.dot(h1, w2, preferred_element_type=jnp.float32) + b2, 0.0)

    w3 = w_ref[o_w3:o_w3 + F, :]
    b3 = w_ref[o_b3:o_b3 + 1, :]
    q = jnp.dot(h2, w3, preferred_element_type=jnp.float32) + b3

    q_ref[...] = q.astype(q_ref.dtype)


def pack_params(params, feat_pad=LANE):
    """Pack (W1,b1,W2,b2,W3,b3) into one tile-aligned fp32 slab.

    Each W is zero-padded to (feat_pad, feat_pad); each bias occupies an
    8-row block (row 0 real, rest zero) so every segment starts 8-row aligned.
    Zero padding keeps the padded MLP numerically identical on the real
    rows/cols (relu(0+0)=0 propagates cleanly through all layers).
    """
    w1, b1, w2, b2, w3, b3 = params
    F = feat_pad

    def pad_w(w):
        w = w.astype(jnp.float32)
        return jnp.pad(w, ((0, F - w.shape[0]), (0, F - w.shape[1])))

    def pad_b(b):
        b = b.reshape(1, -1).astype(jnp.float32)
        return jnp.pad(b, ((0, SUBLANE - 1), (0, F - b.shape[1])))

    return jnp.concatenate(
        [pad_w(w1), pad_b(b1), pad_w(w2), pad_b(b2), pad_w(w3), pad_b(b3)],
        axis=0)                                            # (3F + 24, F)


@functools.partial(jax.jit, static_argnames=("action_size",))
def dqn_forward(s, slab, action_size):
    """Run the fused MLP kernel. `slab` comes from pack_params (reused across calls)."""
    batch, state_size = s.shape
    feat = slab.shape[1]

    b_pad = _round_up(max(batch, SUBLANE), SUBLANE)
    s_pad = jnp.pad(s.astype(jnp.float32),
                    ((0, b_pad - batch), (0, feat - state_size)))

    q_pad = pl.pallas_call(
        functools.partial(dqn_mlp_kernel, feat=feat),
        out_shape=jax.ShapeDtypeStruct((b_pad, feat), jnp.float32),
        in_specs=[
            pl.BlockSpec(memory_space=pltpu.MemorySpace.VMEM),   # states
            pl.BlockSpec(memory_space=pltpu.MemorySpace.VMEM),   # packed weights
        ],
        out_specs=pl.BlockSpec(memory_space=pltpu.MemorySpace.VMEM),
    )(s_pad, slab)

    return q_pad[:batch, :action_size]


def init_params(key, state_size, action_size, hidden_shape):
    """Deterministic init mirroring nn.Linear's U(-1/sqrt(fan_in), +1/sqrt(fan_in)).

    Weights stored as (in_features, out_features) — transpose of PyTorch.
    """
    def linear(k, fan_in, fan_out):
        kw, kb = jax.random.split(k)
        bound = 1.0 / jnp.sqrt(fan_in)
        w = jax.random.uniform(kw, (fan_in, fan_out), jnp.float32, -bound, bound)
        b = jax.random.uniform(kb, (1, fan_out), jnp.float32, -bound, bound)
        return w, b

    k1, k2, k3 = jax.random.split(key, 3)
    w1, b1 = linear(k1, state_size, hidden_shape)
    w2, b2 = linear(k2, hidden_shape, hidden_shape)
    w3, b3 = linear(k3, hidden_shape, action_size)
    return (w1, b1, w2, b2, w3, b3)


def dqn_forward_ref(s, params):
    """Pure-JAX reference for correctness check."""
    w1, b1, w2, b2, w3, b3 = params
    h1 = jnp.maximum(s @ w1 + b1, 0.0)
    h2 = jnp.maximum(h1 @ w2 + b2, 0.0)
    return h2 @ w3 + b3


if __name__ == "__main__":
    # CartPole-like sizes: state=4, actions=2, hidden=32; replay-sized batch=128.
    state_size, action_size, hidden_shape, batch = 4, 2, 32, 128

    key = jax.random.PRNGKey(0)
    k_params, k_input = jax.random.split(key)

    params = init_params(k_params, state_size, action_size, hidden_shape)
    slab = pack_params(params)                      # packed once, reused per call
    s = jax.random.normal(k_input, (batch, state_size), jnp.float32)

    q = dqn_forward(s, slab, action_size)
    q = jax.block_until_ready(q)

    q_ref = dqn_forward_ref(s, params)
    assert q.shape == (batch, action_size)
    assert jnp.allclose(q, q_ref, atol=1e-5, rtol=1e-5), "mismatch vs JAX reference"

    print("KERNEL_OK")
</pallas_src>

<mosaic_0001>
module attributes {stable_mosaic.version = 11 : i64} {
  func.func @dqn_mlp_kernel(%arg0: memref<128x128xf32, #tpu.memory_space<vmem>>, %arg1: memref<408x128xf32, #tpu.memory_space<vmem>>, %arg2: memref<128x128xf32, #tpu.memory_space<vmem>>) attributes {dimension_semantics = [], scalar_prefetch = 0 : i64, scratch_operands = 0 : i64, tpu.core_type = #tpu.core_type<tc>} {
    %c0 = arith.constant 0 : index
    %c0_0 = arith.constant 0 : index
    %0 = vector.load %arg0[%c0, %c0_0] : memref<128x128xf32, #tpu.memory_space<vmem>>, vector<128x128xf32>
    %c0_1 = arith.constant 0 : index
    %c0_2 = arith.constant 0 : index
    %1 = vector.load %arg1[%c0_1, %c0_2] : memref<408x128xf32, #tpu.memory_space<vmem>>, vector<128x128xf32>
    %c128 = arith.constant 128 : index
    %c0_3 = arith.constant 0 : index
    %2 = vector.load %arg1[%c128, %c0_3] : memref<408x128xf32, #tpu.memory_space<vmem>>, vector<1x128xf32>
    %cst = arith.constant dense<0.000000e+00> : vector<128x128xf32>
    %3 = tpu.matmul %0, %1, %cst {dimension_numbers = #tpu.dot_dimension_numbers<[1], [0], [0], [1], [0, 0, 1, 1], [], []>} : vector<128x128xf32>, vector<128x128xf32>, vector<128x128xf32> -> vector<128x128xf32>
    %4 = vector.broadcast %2 : vector<1x128xf32> to vector<128x128xf32>
    %5 = arith.addf %3, %4 : vector<128x128xf32>
    %cst_4 = arith.constant 0.000000e+00 : f32
    %6 = vector.broadcast %cst_4 : f32 to vector<128x128xf32>
    %7 = arith.maximumf %5, %6 : vector<128x128xf32>
    %c136 = arith.constant 136 : index
    %c0_5 = arith.constant 0 : index
    %8 = vector.load %arg1[%c136, %c0_5] : memref<408x128xf32, #tpu.memory_space<vmem>>, vector<128x128xf32>
    %c264 = arith.constant 264 : index
    %c0_6 = arith.constant 0 : index
    %9 = vector.load %arg1[%c264, %c0_6] : memref<408x128xf32, #tpu.memory_space<vmem>>, vector<1x128xf32>
    %cst_7 = arith.constant dense<0.000000e+00> : vector<128x128xf32>
    %10 = tpu.matmul %7, %8, %cst_7 {dimension_numbers = #tpu.dot_dimension_numbers<[1], [0], [0], [1], [0, 0, 1, 1], [], []>} : vector<128x128xf32>, vector<128x128xf32>, vector<128x128xf32> -> vector<128x128xf32>
    %11 = vector.broadcast %9 : vector<1x128xf32> to vector<128x128xf32>
    %12 = arith.addf %10, %11 : vector<128x128xf32>
    %cst_8 = arith.constant 0.000000e+00 : f32
    %13 = vector.broadcast %cst_8 : f32 to vector<128x128xf32>
    %14 = arith.maximumf %12, %13 : vector<128x128xf32>
    %c272 = arith.constant 272 : index
    %c0_9 = arith.constant 0 : index
    %15 = vector.load %arg1[%c272, %c0_9] : memref<408x128xf32, #tpu.memory_space<vmem>>, vector<128x128xf32>
    %c400 = arith.constant 400 : index
    %c0_10 = arith.constant 0 : index
    %16 = vector.load %arg1[%c400, %c0_10] : memref<408x128xf32, #tpu.memory_space<vmem>>, vector<1x128xf32>
    %cst_11 = arith.constant dense<0.000000e+00> : vector<128x128xf32>
    %17 = tpu.matmul %14, %15, %cst_11 {dimension_numbers = #tpu.dot_dimension_numbers<[1], [0], [0], [1], [0, 0, 1, 1], [], []>} : vector<128x128xf32>, vector<128x128xf32>, vector<128x128xf32> -> vector<128x128xf32>
    %18 = vector.broadcast %16 : vector<1x128xf32> to vector<128x128xf32>
    %19 = arith.addf %17, %18 : vector<128x128xf32>
    %c0_12 = arith.constant 0 : index
    %c0_13 = arith.constant 0 : index
    %20 = vector.load %arg2[%c0_12, %c0_13] : memref<128x128xf32, #tpu.memory_space<vmem>>, vector<128x128xf32>
    tpu.vector_store %arg2[%c0_12, %c0_13], %19 {strides = array<i32>} : memref<128x128xf32, #tpu.memory_space<vmem>>, vector<128x128xf32>,
    return
  }
}

</mosaic_0001>

<bundles_post_ra>
// kernel: dqn_forward.1
= control target key start
LH: loop header
LB: loop body
LE: loop exit
PB: predicated region body
PF: predicated region fallthrough
CT: control target
= control target key end

     0   :  { %7 = vsyncpa [#allocation3], 0  ;;  %s998_s9 = smov [#allocation2]   ;;  %s1166_s0 = inlined_call_operand.vmem [shape: f32[128,128], index: 0, kind: input, shape index: {}]   ;;  %s1167_s1 = inlined_call_operand.hbm [shape: f32[408,128], index: 1, kind: input, shape index: {}]   ;;  %s1168_s2 = inlined_call_operand.vmem [shape: f32[128,128], index: 2, kind: output, shape index: {}]  }
   0x1   :  { %s15_s10 = sshll.u32 %s998_s9, 4  ;;  %s974_s13 = scalar_lea.hbm %s1167_s1, 6528  ;;  %s16_s10 = int_to_ptr.vmem [resolvable:$true] %s15_s10 }
   0x2   :  { %p975_p0 = scmp.ne.s32.totalorder %s1167_s1, %s974_s13  ;;  %p978_p1 = scmp.lt.u32.totalorder %s974_s13, %s1167_s1 }
   0x4   :  { %p980_p2 = pnand %p978_p1, %p975_p0 }
   0x6   :  { %983 = shalt.err (!%p980_p2)
}
   0x7   :  { %s984_s18 = scalar_lea.vmem %s16_s10, 6528  ;;  %p989_p4 = scmp.lt.s32.totalorder %s16_s10, %s16_s10 }
   0x8   :  { %p985_p3 = scmp.ne.s32.totalorder %s16_s10, %s984_s18  ;;  %p990_p5 = scmp.lt.s32.totalorder %s984_s18, %s984_s18 }
   0xa   :  { %p991_p6 = por %p990_p5, %p989_p4 }
   0xc   :  { %p992_p7 = pnand %p991_p6, %p985_p3 }
   0xe   :  { %995 = shalt.err (!%p992_p7)
}
   0xf   :  { %s999_s19 = smov 128   ;;  %s1000_s20 = smov 8  }
  0x10   :  { %21 = dma.hbm_to_vmem [thread:$0]  %s1167_s1, 6528, %s16_s10, [#allocation3], %s999_s19, %s999_s19, %s1000_s20  }
  0x11   :  { %996 = dma.done.wait [#allocation3], 6528  }
  0x12   :  { %997 = vsyncadd [#allocation3], 4294960768  ;;  %v41_v0 = vld [vmem:[#allocation2] sm:$0xff]  ;;  %v42_v1 = vld [vmem:[#allocation2 + $0x8] sm:$0xff] }
  0x13   :  { %v43_v2 = vld [vmem:[#allocation2 + $0x10] sm:$0xff]  ;;  %v859_v3 = vpack.c.bf16 %v42_v1, %v41_v0  ;;  %v44_v4 = vld [vmem:[#allocation2 + $0x18] sm:$0xff]  ;;  %v45_v6 = vld [vmem:[#allocation2 + $0x20] sm:$0xff] }
  0x14   :  { %v863_v5 = vpack.c.bf16 %v44_v4, %v43_v2  ;;  %v46_v7 = vld [vmem:[#allocation2 + $0x28] sm:$0xff]  ;;  %v25_v9 = vld [vmem:[%s1166_s0] sm:$0xff]  ;;  %v47_v10 = vld [vmem:[#allocation2 + $0x30] sm:$0xff] }
  0x15   :  { %860 = vmatprep.subr.bf16.mxu0 %v859_v3  ;;  %v867_v8 = vpack.c.bf16 %v46_v7, %v45_v6  ;;  %v48_v11 = vld [vmem:[#allocation2 + $0x38] sm:$0xff]  ;;  %723 = vmatprep.mubr.f32.mxu0 %v25_v9  ;;  %v49_v13 = vld [vmem:[#allocation2 + $0x40] sm:$0xff]  ;;  %v50_v14 = vld [vmem:[#allocation2 + $0x48] sm:$0xff] }
  0x16   :  { %862 = vmatpush3.bf16.msra.mxu0 %v859_v3  ;;  %v871_v12 = vpack.c.bf16 %v48_v11, %v47_v10  ;;  %v223_v15 = vld [vmem:[#allocation2 + $0x88] sm:$0xff]  ;;  %v224_v16 = vld [vmem:[#allocation2 + $0x90] sm:$0xff]  ;;  %v225_v17 = vld [vmem:[#allocation2 + $0x98] sm:$0xff]  ;;  %v875_v21 = vpack.c.bf16 %v50_v14, %v49_v13 }
  0x17   :  { %864 = vmatprep.subr.bf16.mxu0 %v863_v5  ;;  %v226_v18 = vld [vmem:[#allocation2 + $0xa0] sm:$0xff]  ;;  %v891_v19 = vpack.c.bf16 %v224_v16, %v223_v15  ;;  %v227_v22 = vld [vmem:[#allocation2 + $0xa8] sm:$0xff]  ;;  %v228_v23 = vld [vmem:[#allocation2 + $0xb0] sm:$0xff] }
  0x18   :  { %v895_v20 = vpack.c.bf16 %v226_v18, %v225_v17  ;;  %v51_v24 = vld [vmem:[#allocation2 + $0x50] sm:$0xff]  ;;  %v52_v25 = vld [vmem:[#allocation2 + $0x58] sm:$0xff]  ;;  %v899_v26 = vpack.c.bf16 %v228_v23, %v227_v22  ;;  %v230_v29 = vld [vmem:[#allocation2 + $0xc0] sm:$0xff] }
  0x19   :  { %892 = vmatprep.subr.bf16.mxu1 %v891_v19  ;;  %v879_v27 = vpack.c.bf16 %v52_v25, %v51_v24  ;;  %v229_v28 = vld [vmem:[#allocation2 + $0xb8] sm:$0xff]  ;;  %v53_v30 = vld [vmem:[#allocation2 + $0x60] sm:$0xff]  ;;  %v54_v31 = vld [vmem:[#allocation2 + $0x68] sm:$0xff] }
  0x1a   :  { %866 = vmatpush3.bf16.msra.mxu0 %v863_v5  ;;  %894 = vmatpush3.bf16.msra.mxu1 %v891_v19  ;;  %v903_v32 = vpack.c.bf16 %v230_v29, %v229_v28  ;;  %v883_v33 = vpack.c.bf16 %v54_v31, %v53_v30  ;;  %v231_v34 = vld [vmem:[#allocation2 + $0xc8] sm:$0xff]  ;;  %v232_v35 = vld [vmem:[#allocation2 + $0xd0] sm:$0xff]  ;;  %v56_v37 = vld [vmem:[#allocation2 + $0x78] sm:$0xff] }
  0x1b   :  { %868 = vmatprep.subr.bf16.mxu0 %v867_v8  ;;  %896 = vmatprep.subr.bf16.mxu1 %v895_v20  ;;  %v55_v36 = vld [vmem:[#allocation2 + $0x70] sm:$0xff]  ;;  %v907_v38 = vpack.c.bf16 %v232_v35, %v231_v34  ;;  %v233_v40 = vld [vmem:[#allocation2 + $0xd8] sm:$0xff]  ;;  %v234_v41 = vld [vmem:[#allocation2 + $0xe0] sm:$0xff] }
  0x1c   :  { %v887_v39 = vpack.c.bf16 %v56_v37, %v55_v36  ;;  %v911_v42 = vpack.c.bf16 %v234_v41, %v233_v40  ;;  %v235_v43 = vld [vmem:[#allocation2 + $0xe8] sm:$0xff]  ;;  %v236_v44 = vld [vmem:[#allocation2 + $0xf0] sm:$0xff]  ;;  %v28_v48 = vld [vmem:[%s1166_s0 + $0x18] sm:$0xff] }
  0x1d   :  { %v26_v45 = vld [vmem:[%s1166_s0 + $0x8] sm:$0xff]  ;;  %v915_v46 = vpack.c.bf16 %v236_v44, %v235_v43  ;;  %v27_v47 = vld [vmem:[%s1166_s0 + $0x10] sm:$0xff]  ;;  %v29_v49 = vld [vmem:[%s1166_s0 + $0x20] sm:$0xff] }
  0x1e   :  { %870 = vmatpush3.bf16.msra.mxu0 %v867_v8  ;;  %898 = vmatpush3.bf16.msra.mxu1 %v895_v20  ;;  %v30_v50 = vld [vmem:[%s1166_s0 + $0x28] sm:$0xff]  ;;  %v31_v51 = vld [vmem:[%s1166_s0 + $0x30] sm:$0xff]  ;;  %v32_v52 = vld [vmem:[%s1166_s0 + $0x38] sm:$0xff] }
  0x1f   :  { %872 = vmatprep.subr.bf16.mxu0 %v871_v12  ;;  %900 = vmatprep.subr.bf16.mxu1 %v899_v26  ;;  %v33_v53 = vld [vmem:[%s1166_s0 + $0x40] sm:$0xff]  ;;  %v34_v54 = vld [vmem:[%s1166_s0 + $0x48] sm:$0xff]  ;;  %v35_v55 = vld [vmem:[%s1166_s0 + $0x50] sm:$0xff] }
  0x20   :  { %v36_v56 = vld [vmem:[%s1166_s0 + $0x58] sm:$0xff]  ;;  %v37_v57 = vld [vmem:[%s1166_s0 + $0x60] sm:$0xff]  ;;  %v38_v58 = vld [vmem:[%s1166_s0 + $0x68] sm:$0xff] }
  0x21   :  { %v39_v59 = vld [vmem:[%s1166_s0 + $0x70] sm:$0xff]  ;;  %v40_v60 = vld [vmem:[%s1166_s0 + $0x78] sm:$0xff]  ;;  %v238_v62 = vld [vmem:[#allocation2 + $0x100] sm:$0xff] }
  0x22   :  { %874 = vmatpush3.bf16.msra.mxu0 %v871_v12  ;;  %902 = vmatpush3.bf16.msra.mxu1 %v899_v26  ;;  %v237_v61 = vld [vmem:[#allocation2 + $0xf8] sm:$0xff]  ;;  %v405_v0 = vld [vmem:[#allocation2 + $0x110] sm:$0xff]  ;;  %v407_v2 = vld [vmem:[#allocation2 + $0x120] sm:$0xff] }
  0x23   :  { %876 = vmatprep.subr.bf16.mxu0 %v875_v21  ;;  %904 = vmatprep.subr.bf16.mxu1 %v903_v32  ;;  %v919_v63 = vpack.c.bf16 %v238_v62, %v237_v61  ;;  %v406_v1 = vld [vmem:[#allocation2 + $0x118] sm:$0xff]  ;;  %v408_v4 = vld [vmem:[#allocation2 + $0x128] sm:$0xff]  ;;  %v409_v6 = vld [vmem:[#allocation2 + $0x130] sm:$0xff] }
  0x24   :  { %v923_v3 = vpack.c.bf16 %v406_v1, %v405_v0  ;;  %v927_v5 = vpack.c.bf16 %v408_v4, %v407_v2  ;;  %v410_v7 = vld [vmem:[#allocation2 + $0x138] sm:$0xff]  ;;  %v411_v9 = vld [vmem:[#allocation2 + $0x140] sm:$0xff]  ;;  %v412_v10 = vld [vmem:[#allocation2 + $0x148] sm:$0xff] }
  0x25   :  { %v931_v8 = vpack.c.bf16 %v410_v7, %v409_v6  ;;  %v1076_v11 = vpack.c.bf16 %v412_v10, %v411_v9  ;;  %v413_v12 = vld [vmem:[#allocation2 + $0x150] sm:$0xff]  ;;  %v414_v13 = vld [vmem:[#allocation2 + $0x158] sm:$0xff]  ;;  %v415_v15 = vld [vmem:[#allocation2 + $0x160] sm:$0xff] }
  0x26   :  { %878 = vmatpush3.bf16.msra.mxu0 %v875_v21  ;;  %906 = vmatpush3.bf16.msra.mxu1 %v903_v32  ;;  %v1079_v14 = vpack.c.bf16 %v414_v13, %v413_v12  ;;  %v416_v16 = vld [vmem:[#allocation2 + $0x168] sm:$0xff]  ;;  %v417_v18 = vld [vmem:[#allocation2 + $0x170] sm:$0xff]  ;;  %v418_v19 = vld [vmem:[#allocation2 + $0x178] sm:$0xff] }
  0x27   :  { %880 = vmatprep.subr.bf16.mxu0 %v879_v27  ;;  %908 = vmatprep.subr.bf16.mxu1 %v907_v38  ;;  %v1083_v17 = vpack.c.bf16 %v416_v16, %v415_v15  ;;  %v1087_v20 = vpack.c.bf16 %v418_v19, %v417_v18  ;;  %v1092_v21 = vld [vmem:[#allocation2 + $0x80] ss:$0 sm:$0xff]  ;;  %v420_v7 = vld [vmem:[#allocation2 + $0x188] sm:$0xff] }
  0x28   :  { %v419_v6 = vld [vmem:[#allocation2 + $0x180] sm:$0xff]  ;;  %v593_v9 = vld [vmem:[#allocation2 + $0x108] ss:$0 sm:$0xff] }
  0x2a   :  { %882 = vmatpush3.bf16.msra.mxu0 %v879_v27  ;;  %910 = vmatpush3.bf16.msra.mxu1 %v907_v38 }
  0x2b   :  { %884 = vmatprep.subr.bf16.mxu0 %v883_v33  ;;  %912 = vmatprep.subr.bf16.mxu1 %v911_v42 }
  0x2e   :  { %886 = vmatpush3.bf16.msra.mxu0 %v883_v33  ;;  %914 = vmatpush3.bf16.msra.mxu1 %v911_v42 }
  0x2f   :  { %888 = vmatprep.subr.bf16.mxu0 %v887_v39  ;;  %916 = vmatprep.subr.bf16.mxu1 %v915_v46 }
  0x32   :  { %890 = vmatpush3.bf16.msra.mxu0 %v887_v39  ;;  %918 = vmatpush3.bf16.msra.mxu1 %v915_v46 }
  0x33   :  { %920 = vmatprep.subr.bf16.mxu1 %v919_v63  ;;  %924 = vmatprep.subr.bf16.mxu0 %v923_v3 }
  0x35   :  { %724 = vmatmul.mubr.f32.vlgmr.msra.gmra.mrb[0].mxu0 %v26_v45 }
  0x36   :  { %726 = vmatprep.mubr.f32.mxu0 %v27_v47  ;;  %922 = vmatpush3.bf16.msra.mxu1 %v919_v63 }
  0x37   :  { %955 = vmatprep.subr.bf16.mxu1 %v923_v3  ;;  %926 = vmatpush3.bf16.msra.mxu0 %v923_v3 }
  0x38   :  { %928 = vmatprep.subr.bf16.mxu0 %v927_v5 }
  0x39   :  { %727 = vmatmul.mubr.f32.gmra.mrb[2].mxu0 %v28_v48 }
  0x3a   :  { %729 = vmatprep.mubr.f32.mxu0 %v29_v49 }
  0x3b   :  { %930 = vmatpush3.bf16.msra.mxu0 %v927_v5 }
  0x3c   :  { %932 = vmatprep.subr.bf16.mxu0 %v931_v8 }
  0x3d   :  { %730 = vmatmul.mubr.f32.gmra.mrb[4].mxu0 %v30_v50 }
  0x3e   :  { %732 = vmatprep.mubr.f32.mxu0 %v31_v51 }
  0x3f   :  { %934 = vmatpush3.bf16.msra.mxu0 %v931_v8 }
  0x40   :  { %936 = vmatprep.subr.bf16.mxu0 %v1076_v11 }
  0x41   :  { %733 = vmatmul.mubr.f32.gmra.mrb[6].mxu0 %v32_v52 }
  0x42   :  { %735 = vmatprep.mubr.f32.mxu0 %v33_v53 }
  0x43   :  { %938 = vmatpush3.bf16.msra.mxu0 %v1076_v11 }
  0x44   :  { %940 = vmatprep.subr.bf16.mxu0 %v1079_v14 }
  0x45   :  { %736 = vmatmul.mubr.f32.gmra.mrb[8].mxu0 %v34_v54 }
  0x46   :  { %738 = vmatprep.mubr.f32.mxu0 %v35_v55 }
  0x47   :  { %942 = vmatpush3.bf16.msra.mxu0 %v1079_v14 }
  0x48   :  { %944 = vmatprep.subr.bf16.mxu0 %v1083_v17 }
  0x49   :  { %739 = vmatmul.mubr.f32.gmra.mrb[10].mxu0 %v36_v56 }
  0x4a   :  { %741 = vmatprep.mubr.f32.mxu0 %v37_v57 }
  0x4b   :  { %946 = vmatpush3.bf16.msra.mxu0 %v1083_v17 }
  0x4c   :  { %948 = vmatprep.subr.bf16.mxu0 %v1087_v20 }
  0x4d   :  { %742 = vmatmul.mubr.f32.gmra.mrb[12].mxu0 %v38_v58 }
  0x4e   :  { %744 = vmatprep.mubr.f32.mxu0 %v39_v59 }
  0x4f   :  { %950 = vmatpush3.bf16.msra.mxu0 %v1087_v20 }
  0x51   :  { %745 = vmatmul.mubr.f32.gmra.mrb[14].mxu0 %v40_v60 }
 0x108   :  { %v725_v22 = vpop.f32.mrb[0].mxu0 }
 0x109   :  { %v134_v23 = vadd.f32 %v725_v22, %v1092_v21  ;;  %v128_v24 = vpop.f32.mrb[1].mxu0 }
 0x10a   :  { %v129_v25 = vadd.f32 %v1092_v21, %v128_v24 }
 0x10b   :  { %v208_v28 = vmax.f32 %v134_v23, 0.0 }
 0x10c   :  { %v728_v26 = vpop.f32.mrb[2].mxu0  ;;  %v207_v27 = vmax.f32 %v129_v25, 0.0 }
 0x10d   :  { %v144_v29 = vadd.f32 %v728_v26, %v1092_v21  ;;  %v138_v30 = vpop.f32.mrb[3].mxu0 }
 0x10e   :  { %v139_v31 = vadd.f32 %v1092_v21, %v138_v30  ;;  %779 = vmatprep.mubr.f32.mxu1 %v207_v27 }
 0x10f   :  { %780 = vmatmul.mubr.f32.vlgmr.msra.gmra.mrb[0].mxu1 %v208_v28  ;;  %v210_v34 = vmax.f32 %v144_v29, 0.0 }
 0x110   :  { %v209_v32 = vmax.f32 %v139_v31, 0.0  ;;  %v731_v33 = vpop.f32.mrb[4].mxu0  ;;  %963 = vmatpush3.bf16.msra.mxu1 %v923_v3 }
 0x111   :  { %v154_v35 = vadd.f32 %v731_v33, %v1092_v21  ;;  %v148_v36 = vpop.f32.mrb[5].mxu0  ;;  %956 = vmatprep.subr.bf16.mxu1 %v927_v5 }
 0x112   :  { %v149_v37 = vadd.f32 %v1092_v21, %v148_v36  ;;  %782 = vmatprep.mubr.f32.mxu1 %v209_v32 }
 0x113   :  { %783 = vmatmul.mubr.f32.gmra.mrb[2].mxu1 %v210_v34  ;;  %v212_v40 = vmax.f32 %v154_v35, 0.0 }
 0x114   :  { %v211_v38 = vmax.f32 %v149_v37, 0.0  ;;  %v734_v39 = vpop.f32.mrb[6].mxu0  ;;  %964 = vmatpush3.bf16.msra.mxu1 %v927_v5 }
 0x115   :  { %v164_v41 = vadd.f32 %v734_v39, %v1092_v21  ;;  %v158_v42 = vpop.f32.mrb[7].mxu0  ;;  %957 = vmatprep.subr.bf16.mxu1 %v931_v8 }
 0x116   :  { %v159_v43 = vadd.f32 %v1092_v21, %v158_v42  ;;  %785 = vmatprep.mubr.f32.mxu1 %v211_v38 }
 0x117   :  { %786 = vmatmul.mubr.f32.gmra.mrb[4].mxu1 %v212_v40  ;;  %v214_v46 = vmax.f32 %v164_v41, 0.0 }
 0x118   :  { %v213_v44 = vmax.f32 %v159_v43, 0.0  ;;  %v737_v45 = vpop.f32.mrb[8].mxu0  ;;  %965 = vmatpush3.bf16.msra.mxu1 %v931_v8  ;;  %v951_v8 = vpack.c.bf16 %v420_v7, %v419_v6 }
 0x119   :  { %v174_v47 = vadd.f32 %v737_v45, %v1092_v21  ;;  %v168_v48 = vpop.f32.mrb[9].mxu0  ;;  %958 = vmatprep.subr.bf16.mxu1 %v1076_v11 }
 0x11a   :  { %v169_v49 = vadd.f32 %v1092_v21, %v168_v48  ;;  %788 = vmatprep.mubr.f32.mxu1 %v213_v44  ;;  %952 = vmatprep.subr.bf16.mxu0 %v951_v8 }
 0x11b   :  { %789 = vmatmul.mubr.f32.gmra.mrb[6].mxu1 %v214_v46  ;;  %v216_v52 = vmax.f32 %v174_v47, 0.0  ;;  %954 = vmatpush3.bf16.msra.mxu0 %v951_v8 }
 0x11c   :  { %v215_v50 = vmax.f32 %v169_v49, 0.0  ;;  %v740_v51 = vpop.f32.mrb[10].mxu0  ;;  %966 = vmatpush3.bf16.msra.mxu1 %v1076_v11 }
 0x11d   :  { %v184_v53 = vadd.f32 %v740_v51, %v1092_v21  ;;  %v178_v54 = vpop.f32.mrb[11].mxu0  ;;  %959 = vmatprep.subr.bf16.mxu1 %v1079_v14 }
 0x11e   :  { %v179_v55 = vadd.f32 %v1092_v21, %v178_v54  ;;  %791 = vmatprep.mubr.f32.mxu1 %v215_v50 }
 0x11f   :  { %792 = vmatmul.mubr.f32.gmra.mrb[8].mxu1 %v216_v52  ;;  %v218_v58 = vmax.f32 %v184_v53, 0.0 }
 0x120   :  { %v217_v56 = vmax.f32 %v179_v55, 0.0  ;;  %v743_v57 = vpop.f32.mrb[12].mxu0  ;;  %967 = vmatpush3.bf16.msra.mxu1 %v1079_v14 }
 0x121   :  { %v194_v59 = vadd.f32 %v743_v57, %v1092_v21  ;;  %v188_v60 = vpop.f32.mrb[13].mxu0  ;;  %960 = vmatprep.subr.bf16.mxu1 %v1083_v17 }
 0x122   :  { %v189_v61 = vadd.f32 %v1092_v21, %v188_v60  ;;  %794 = vmatprep.mubr.f32.mxu1 %v217_v56 }
 0x123   :  { %795 = vmatmul.mubr.f32.gmra.mrb[10].mxu1 %v218_v58  ;;  %v220_v0 = vmax.f32 %v194_v59, 0.0  ;;  %v594_v58 = vld [vmem:[#allocation2 + $0x190] ss:$0 sm:$0xff] }
 0x124   :  { %v219_v62 = vmax.f32 %v189_v61, 0.0  ;;  %v746_v63 = vpop.f32.mrb[14].mxu0  ;;  %968 = vmatpush3.bf16.msra.mxu1 %v1083_v17 }
 0x125   :  { %v204_v1 = vadd.f32 %v746_v63, %v1092_v21  ;;  %v198_v2 = vpop.f32.mrb[15].mxu0  ;;  %961 = vmatprep.subr.bf16.mxu1 %v1087_v20 }
 0x126   :  { %v199_v3 = vadd.f32 %v1092_v21, %v198_v2  ;;  %797 = vmatprep.mubr.f32.mxu1 %v219_v62 }
 0x127   :  { %798 = vmatmul.mubr.f32.gmra.mrb[12].mxu1 %v220_v0  ;;  %v222_v5 = vmax.f32 %v204_v1, 0.0 }
 0x128   :  { %v221_v4 = vmax.f32 %v199_v3, 0.0  ;;  %969 = vmatpush3.bf16.msra.mxu1 %v1087_v20 }
 0x129   :  { %962 = vmatprep.subr.bf16.mxu1 %v951_v8 }
 0x12a   :  { %800 = vmatprep.mubr.f32.mxu1 %v221_v4 }
 0x12b   :  { %801 = vmatmul.mubr.f32.gmra.mrb[14].mxu1 %v222_v5 }
 0x12c   :  { %970 = vmatpush3.bf16.msra.mxu1 %v951_v8 }
 0x1e2   :  { %v781_v10 = vpop.f32.mrb[0].mxu1 }
 0x1e3   :  { %v316_v11 = vadd.f32 %v781_v10, %v593_v9  ;;  %v310_v12 = vpop.f32.mrb[1].mxu1 }
 0x1e4   :  { %v311_v13 = vadd.f32 %v593_v9, %v310_v12 }
 0x1e5   :  { %v390_v16 = vmax.f32 %v316_v11, 0.0 }
 0x1e6   :  { %v389_v14 = vmax.f32 %v311_v13, 0.0  ;;  %v784_v15 = vpop.f32.mrb[2].mxu1 }
 0x1e7   :  { %v326_v17 = vadd.f32 %v784_v15, %v593_v9  ;;  %v320_v18 = vpop.f32.mrb[3].mxu1 }
 0x1e8   :  { %v321_v19 = vadd.f32 %v593_v9, %v320_v18  ;;  %835 = vmatprep.mubr.f32.mxu0 %v389_v14 }
 0x1e9   :  { %836 = vmatmul.mubr.f32.vlgmr.msra.gmra.mrb[16].mxu0 %v390_v16  ;;  %v392_v22 = vmax.f32 %v326_v17, 0.0 }
 0x1ea   :  { %v391_v20 = vmax.f32 %v321_v19, 0.0  ;;  %v787_v21 = vpop.f32.mrb[4].mxu1 }
 0x1eb   :  { %v336_v23 = vadd.f32 %v787_v21, %v593_v9  ;;  %v330_v24 = vpop.f32.mrb[5].mxu1 }
 0x1ec   :  { %v331_v25 = vadd.f32 %v593_v9, %v330_v24  ;;  %838 = vmatprep.mubr.f32.mxu0 %v391_v20 }
 0x1ed   :  { %839 = vmatmul.mubr.f32.gmra.mrb[18].mxu0 %v392_v22  ;;  %v394_v28 = vmax.f32 %v336_v23, 0.0 }
 0x1ee   :  { %v393_v26 = vmax.f32 %v331_v25, 0.0  ;;  %v790_v27 = vpop.f32.mrb[6].mxu1 }
 0x1ef   :  { %v346_v29 = vadd.f32 %v790_v27, %v593_v9  ;;  %v340_v30 = vpop.f32.mrb[7].mxu1 }
 0x1f0   :  { %v341_v31 = vadd.f32 %v593_v9, %v340_v30  ;;  %841 = vmatprep.mubr.f32.mxu0 %v393_v26 }
 0x1f1   :  { %842 = vmatmul.mubr.f32.gmra.mrb[20].mxu0 %v394_v28  ;;  %v396_v34 = vmax.f32 %v346_v29, 0.0 }
 0x1f2   :  { %v395_v32 = vmax.f32 %v341_v31, 0.0  ;;  %v793_v33 = vpop.f32.mrb[8].mxu1 }
 0x1f3   :  { %v356_v35 = vadd.f32 %v793_v33, %v593_v9  ;;  %v350_v36 = vpop.f32.mrb[9].mxu1 }
 0x1f4   :  { %v351_v37 = vadd.f32 %v593_v9, %v350_v36  ;;  %844 = vmatprep.mubr.f32.mxu0 %v395_v32 }
 0x1f5   :  { %845 = vmatmul.mubr.f32.gmra.mrb[22].mxu0 %v396_v34  ;;  %v398_v40 = vmax.f32 %v356_v35, 0.0 }
 0x1f6   :  { %v397_v38 = vmax.f32 %v351_v37, 0.0  ;;  %v796_v39 = vpop.f32.mrb[10].mxu1 }
 0x1f7   :  { %v366_v41 = vadd.f32 %v796_v39, %v593_v9  ;;  %v360_v42 = vpop.f32.mrb[11].mxu1 }
 0x1f8   :  { %v361_v43 = vadd.f32 %v593_v9, %v360_v42  ;;  %847 = vmatprep.mubr.f32.mxu1 %v397_v38 }
 0x1f9   :  { %848 = vmatmul.mubr.f32.vlgmr.msra.gmra.mrb[16].mxu1 %v398_v40  ;;  %v400_v46 = vmax.f32 %v366_v41, 0.0 }
 0x1fa   :  { %v399_v44 = vmax.f32 %v361_v43, 0.0  ;;  %v799_v45 = vpop.f32.mrb[12].mxu1 }
 0x1fb   :  { %v376_v47 = vadd.f32 %v799_v45, %v593_v9  ;;  %v370_v48 = vpop.f32.mrb[13].mxu1 }
 0x1fc   :  { %v371_v49 = vadd.f32 %v593_v9, %v370_v48  ;;  %850 = vmatprep.mubr.f32.mxu1 %v399_v44 }
 0x1fd   :  { %851 = vmatmul.mubr.f32.gmra.mrb[18].mxu1 %v400_v46  ;;  %v402_v52 = vmax.f32 %v376_v47, 0.0 }
 0x1fe   :  { %v401_v50 = vmax.f32 %v371_v49, 0.0  ;;  %v802_v51 = vpop.f32.mrb[14].mxu1 }
 0x1ff   :  { %v386_v53 = vadd.f32 %v802_v51, %v593_v9  ;;  %v380_v54 = vpop.f32.mrb[15].mxu1 }
 0x200   :  { %v381_v55 = vadd.f32 %v593_v9, %v380_v54  ;;  %853 = vmatprep.mubr.f32.mxu1 %v401_v50 }
 0x201   :  { %854 = vmatmul.mubr.f32.gmra.mrb[20].mxu1 %v402_v52  ;;  %v404_v57 = vmax.f32 %v386_v53, 0.0 }
 0x202   :  { %v403_v56 = vmax.f32 %v381_v55, 0.0 }
 0x204   :  { %856 = vmatprep.mubr.f32.mxu1 %v403_v56 }
 0x205   :  { %857 = vmatmul.mubr.f32.gmra.mrb[22].mxu1 %v404_v57 }
 0x2bc   :  { %v837_v59 = vpop.f32.mrb[16].mxu0 }
 0x2bd   :  { %v498_v60 = vadd.f32 %v837_v59, %v594_v58  ;;  %v492_v61 = vpop.f32.mrb[17].mxu0 }
 0x2be   :  { %v493_v62 = vadd.f32 %v594_v58, %v492_v61 }
 0x2bf   :  { %572 = vst [vmem:[%s1168_s2 + $0x8] sm:$0xff] %v498_v60 }
 0x2c0   :  { %571 = vst [vmem:[%s1168_s2] sm:$0xff] %v493_v62  ;;  %v840_v63 = vpop.f32.mrb[18].mxu0 }
 0x2c1   :  { %v508_v0 = vadd.f32 %v840_v63, %v594_v58  ;;  %v502_v1 = vpop.f32.mrb[19].mxu0 }
 0x2c2   :  { %v503_v2 = vadd.f32 %v594_v58, %v502_v1 }
 0x2c3   :  { %574 = vst [vmem:[%s1168_s2 + $0x18] sm:$0xff] %v508_v0 }
 0x2c4   :  { %573 = vst [vmem:[%s1168_s2 + $0x10] sm:$0xff] %v503_v2  ;;  %v843_v3 = vpop.f32.mrb[20].mxu0 }
 0x2c5   :  { %v518_v4 = vadd.f32 %v843_v3, %v594_v58  ;;  %v512_v5 = vpop.f32.mrb[21].mxu0 }
 0x2c6   :  { %v513_v6 = vadd.f32 %v594_v58, %v512_v5 }
 0x2c7   :  { %576 = vst [vmem:[%s1168_s2 + $0x28] sm:$0xff] %v518_v4 }
 0x2c8   :  { %575 = vst [vmem:[%s1168_s2 + $0x20] sm:$0xff] %v513_v6  ;;  %v846_v7 = vpop.f32.mrb[22].mxu0 }
 0x2c9   :  { %v528_v8 = vadd.f32 %v846_v7, %v594_v58  ;;  %v522_v9 = vpop.f32.mrb[23].mxu0 }
 0x2ca   :  { %v523_v10 = vadd.f32 %v594_v58, %v522_v9 }
 0x2cb   :  { %578 = vst [vmem:[%s1168_s2 + $0x38] sm:$0xff] %v528_v8 }
 0x2cc   :  { %577 = vst [vmem:[%s1168_s2 + $0x30] sm:$0xff] %v523_v10  ;;  %v849_v11 = vpop.f32.mrb[16].mxu1 }
 0x2cd   :  { %v538_v12 = vadd.f32 %v849_v11, %v594_v58  ;;  %v532_v13 = vpop.f32.mrb[17].mxu1 }
 0x2ce   :  { %v533_v14 = vadd.f32 %v594_v58, %v532_v13 }
 0x2cf   :  { %580 = vst [vmem:[%s1168_s2 + $0x48] sm:$0xff] %v538_v12 }
 0x2d0   :  { %579 = vst [vmem:[%s1168_s2 + $0x40] sm:$0xff] %v533_v14  ;;  %v852_v15 = vpop.f32.mrb[18].mxu1 }
 0x2d1   :  { %v548_v16 = vadd.f32 %v852_v15, %v594_v58  ;;  %v542_v17 = vpop.f32.mrb[19].mxu1 }
 0x2d2   :  { %v543_v18 = vadd.f32 %v594_v58, %v542_v17 }
 0x2d3   :  { %582 = vst [vmem:[%s1168_s2 + $0x58] sm:$0xff] %v548_v16 }
 0x2d4   :  { %581 = vst [vmem:[%s1168_s2 + $0x50] sm:$0xff] %v543_v18  ;;  %v855_v19 = vpop.f32.mrb[20].mxu1 }
 0x2d5   :  { %v558_v20 = vadd.f32 %v855_v19, %v594_v58  ;;  %v552_v21 = vpop.f32.mrb[21].mxu1 }
 0x2d6   :  { %v553_v22 = vadd.f32 %v594_v58, %v552_v21 }
 0x2d7   :  { %584 = vst [vmem:[%s1168_s2 + $0x68] sm:$0xff] %v558_v20 }
 0x2d8   :  { %583 = vst [vmem:[%s1168_s2 + $0x60] sm:$0xff] %v553_v22  ;;  %v858_v23 = vpop.f32.mrb[22].mxu1 }
 0x2d9   :  { %v568_v24 = vadd.f32 %v858_v23, %v594_v58  ;;  %v562_v25 = vpop.f32.mrb[23].mxu1 }
 0x2da   :  { %v563_v26 = vadd.f32 %v594_v58, %v562_v25 }
 0x2db   :  { %586 = vst [vmem:[%s1168_s2 + $0x78] sm:$0xff] %v568_v24 }
 0x2dc   :  { %585 = vst [vmem:[%s1168_s2 + $0x70] sm:$0xff] %v563_v26 }
 0x2dd   :  { %591 = vsyncpa [#allocation3], 1 }

</bundles_post_ra>
